<compile_context>
chip_gen: v6e
topology: v6e:2x2x1
jax: 0.10.0
libtpu: 0.0.40
codegen_flags: <defaults>
</compile_context>

<pallas_src>
import math

import jax
import jax.numpy as jnp
from jax.experimental import pallas as pl
from jax.experimental.pallas import tpu as pltpu


# ---------------------------------------------------------------------------
# Kernel: streaming add of a (rows, cols) signal tile onto a
# (tile_b, rows, cols) input tile.  Used by both the gridless small path and
# the tiled path.
# ---------------------------------------------------------------------------
def _add_signal_kernel(x_ref, sig_ref, o_ref):
    o_ref[...] = x_ref[...] + sig_ref[...][None, :, :]


# ---------------------------------------------------------------------------
# Host-side helpers.
# ---------------------------------------------------------------------------
def _sinusoidal_signal(length, channels):
    """(length, channels) sinusoidal table, f32, matching the PyTorch module."""
    half = channels // 2
    positions = jnp.arange(length, dtype=jnp.float32)
    # NOTE: the original PyTorch code divides by (half - 1); for channels in
    # {2, 3} that is a divide-by-zero producing NaN/Inf.  Clamp the denominator
    # to keep the table finite; identical for every non-degenerate channel
    # count (half >= 2).
    denom = max(half - 1, 1)
    scale = math.log(10000.0) / float(denom)
    inv_freq = jnp.exp(jnp.arange(half, dtype=jnp.float32) * (-scale))
    scaled_time = positions[:, None] * inv_freq[None, :]
    signal = jnp.concatenate([jnp.sin(scaled_time), jnp.cos(scaled_time)], axis=1)
    if channels % 2 == 1:
        signal = jnp.concatenate(
            [signal, jnp.zeros((length, 1), dtype=jnp.float32)], axis=1)
    return signal


def _vmem_capacity_bytes():
    """Per-TensorCore VMEM capacity, with a conservative v7x fallback."""
    try:
        info = pltpu.get_tpu_info()
        cap = getattr(info, "vmem_capacity_bytes", None)
        if cap:
            return int(cap)
    except Exception:
        pass
    return 64 * 1024 * 1024  # v7x per-TC VMEM (smallest of v5e/v6e/v7x)


def _choose_tiles(B, L2, C2, itemsize, budget_bytes):
    """Pick (tile_rows, tile_b) for blocks of shape (tile_b, tile_rows, C2).

    * tile_rows is a multiple of the dtype's sublane packing (8 f32 / 16 bf16 /
      32 int8) or the full extent L2.
    * Per x-tile payload targets ~4 MiB (capped at 8 MiB) so per-grid-step
      overhead (~0.35 us) stays negligible even at v7x HBM bandwidth.
    * VMEM accounting: x + out double-buffered (4 * tile_b buffers) plus the
      signal double-buffered (2 buffers), each tile_rows * C2 * itemsize bytes.
    * Guarantee >= 2 grid steps where the shape allows it (v7x has 2 TCs).
    """
    sub = max(8, 32 // itemsize)
    row_bytes = C2 * itemsize
    target_tile_bytes = 4 * 1024 * 1024
    max_tile_bytes = 8 * 1024 * 1024

    # Rows first (assuming tile_b = 1): 6 row-tile-sized buffers must fit.
    max_rows_budget = max(1, budget_bytes // (6 * row_bytes))
    target_rows = max(1, target_tile_bytes // row_bytes)
    tile_rows = min(L2, max_rows_budget, target_rows)
    if tile_rows < L2:
        tile_rows = max(sub, (tile_rows // sub) * sub)
        tile_rows = min(tile_rows, L2)  # if L2 < sub, use full extent

    # Fold batch into the block while staying within VMEM budget and the
    # per-tile payload cap.
    tile_bytes = tile_rows * row_bytes
    tb_budget = max(1, (budget_bytes // tile_bytes - 2) // 4)
    tb_payload = max(1, max_tile_bytes // tile_bytes)
    tile_b = min(B, tb_budget, tb_payload)

    # Ensure >= 2 grid steps so both v7x TensorCores get work.
    if pl.cdiv(L2, tile_rows) * pl.cdiv(B, tile_b) < 2:
        if B >= 2:
            tile_b = (B + 1) // 2
        elif tile_rows > sub:
            half_rows = pl.cdiv(pl.cdiv(tile_rows, 2), sub) * sub
            if half_rows < tile_rows:
                tile_rows = half_rows
    return tile_rows, tile_b


# ---------------------------------------------------------------------------
# Public wrapper.
# ---------------------------------------------------------------------------
def positional_embedding(inputs):
    if inputs.ndim != 3:
        raise ValueError("The rank of input must be 3.")
    B, L, C = inputs.shape
    dtype = inputs.dtype
    itemsize = jnp.dtype(dtype).itemsize

    # One-time signal table, cast to the input dtype (matches `.to(inputs)`).
    sig = _sinusoidal_signal(L, C).astype(dtype)

    total_bytes = B * L * C * itemsize

    # ---- Tiny-problem path: a single gridless block (overhead-free). -------
    if total_bytes <= (128 << 10):
        return pl.pallas_call(
            _add_signal_kernel,
            out_shape=jax.ShapeDtypeStruct((B, L, C), dtype),
        )(inputs, sig)

    # ---- General path: tiled, pipelined, bandwidth-bound streaming add. ----
    # Lane-densify: fold k sequence rows into the channel axis so the last
    # dimension is a multiple of 128 (unmasked stores).  Pure layout plumbing.
    k = 1
    if C % 128 != 0:
        kk = 128 // math.gcd(C, 128)
        if L % kk == 0:
            k = kk
        # else: keep C as the last dim (masked partial stores).  Folding over
        # the flattened B*L axis would either duplicate the signal table in
        # HBM or mis-phase it across batch boundaries, so it is not done.
    L2, C2 = L // k, C * k
    x2 = inputs.reshape(B, L2, C2)
    sig2 = sig.reshape(L2, C2)

    vmem_cap = _vmem_capacity_bytes()
    budget = int(vmem_cap * 0.35)
    vmem_limit = int(vmem_cap * 0.75)

    tile_rows, tile_b = _choose_tiles(B, L2, C2, itemsize, budget)
    grid = (pl.cdiv(L2, tile_rows), pl.cdiv(B, tile_b))

    # Grid = (row_tiles, batch_tiles): batch is the innermost axis, so the
    # signal block index (depends only on the row-tile axis) is unchanged
    # across consecutive steps and stays resident in VMEM (no re-DMA).
    out2 = pl.pallas_call(
        _add_signal_kernel,
        out_shape=jax.ShapeDtypeStruct((B, L2, C2), dtype),
        grid=grid,
        in_specs=[
            pl.BlockSpec((tile_b, tile_rows, C2), lambda l, b: (b, l, 0)),
            pl.BlockSpec((tile_rows, C2), lambda l, b: (l, 0)),
        ],
        out_specs=pl.BlockSpec((tile_b, tile_rows, C2), lambda l, b: (b, l, 0)),
        compiler_params=pltpu.CompilerParams(
            dimension_semantics=("parallel", "parallel"),
            vmem_limit_bytes=vmem_limit,
        ),
    )(x2, sig2)

    return out2.reshape(B, L, C)


# ---------------------------------------------------------------------------
# Pure-JAX reference mirroring the PyTorch forward.
# ---------------------------------------------------------------------------
def positional_embedding_ref(inputs):
    B, L, C = inputs.shape
    half = C // 2
    positions = jnp.arange(L, dtype=jnp.float32)
    dims = jnp.arange(half, dtype=jnp.float32)
    scale = math.log(10000.0) / float(max(half - 1, 1))
    dims = jnp.exp(dims * (-scale))
    scaled_time = positions[:, None] * dims[None, :]
    signal = jnp.concatenate([jnp.sin(scaled_time), jnp.cos(scaled_time)], axis=1)
    if C % 2 == 1:
        signal = jnp.concatenate([signal, jnp.zeros((L, 1), jnp.float32)], axis=1)
    return inputs + signal[None].astype(inputs.dtype)


if __name__ == "__main__":
    key = jax.random.PRNGKey(0)
    k0, k1, k2, k3 = jax.random.split(key, 4)

    # Primary smoke test at the module's natural small shape (B=2, L=8, C=32).
    x = jax.random.normal(k0, (2, 8, 32), dtype=jnp.float32)
    out = jax.block_until_ready(positional_embedding(x))
    assert out.shape == (2, 8, 32)
    assert jnp.allclose(out, positional_embedding_ref(x), atol=1e-5, rtol=1e-5)

    # Odd channel count (exercises the zero-pad column), tiny gridless path.
    x_odd = jax.random.normal(k1, (2, 8, 33), dtype=jnp.float32)
    out_odd = jax.block_until_ready(positional_embedding(x_odd))
    assert jnp.allclose(out_odd, positional_embedding_ref(x_odd), atol=1e-5, rtol=1e-5)

    # Tiled path: lane-densifying fold (C=96 -> 384 lanes) + batch tiling
    # (tile_b > 1) + the >=2-step split for two TensorCores.
    x_med = jax.random.normal(k2, (4, 128, 96), dtype=jnp.float32)
    out_med = jax.block_until_ready(positional_embedding(x_med))
    assert jnp.allclose(out_med, positional_embedding_ref(x_med), atol=1e-5, rtol=1e-5)

    # Tiled path, bf16: dtype-aware sublane (16) rounding, multiple row tiles
    # with a ragged final tile, resident reused signal tile.
    x_big = jax.random.normal(k3, (1, 9000, 512), dtype=jnp.bfloat16)
    out_big = jax.block_until_ready(positional_embedding(x_big))
    assert jnp.allclose(out_big.astype(jnp.float32),
                        positional_embedding_ref(x_big).astype(jnp.float32),
                        atol=1e-2, rtol=1e-2)

    print("KERNEL_OK")
</pallas_src>

<mosaic_0001>
module attributes {stable_mosaic.version = 11 : i64} {
  func.func @_add_signal_kernel(%arg0: memref<2x8x32xf32, #tpu.memory_space<vmem>>, %arg1: memref<8x32xf32, #tpu.memory_space<vmem>>, %arg2: memref<2x8x32xf32, #tpu.memory_space<vmem>>) attributes {dimension_semantics = [], scalar_prefetch = 0 : i64, scratch_operands = 0 : i64, tpu.core_type = #tpu.core_type<tc>} {
    %c0 = arith.constant 0 : index
    %c0_0 = arith.constant 0 : index
    %c0_1 = arith.constant 0 : index
    %0 = vector.load %arg0[%c0, %c0_0, %c0_1] : memref<2x8x32xf32, #tpu.memory_space<vmem>>, vector<2x8x32xf32>
    %c0_2 = arith.constant 0 : index
    %c0_3 = arith.constant 0 : index
    %1 = vector.load %arg1[%c0_2, %c0_3] : memref<8x32xf32, #tpu.memory_space<vmem>>, vector<8x32xf32>
    %2 = vector.shape_cast %1 : vector<8x32xf32> to vector<1x8x32xf32>
    %3 = vector.broadcast %2 : vector<1x8x32xf32> to vector<2x8x32xf32>
    %4 = arith.addf %0, %3 : vector<2x8x32xf32>
    %c0_4 = arith.constant 0 : index
    %c0_5 = arith.constant 0 : index
    %c0_6 = arith.constant 0 : index
    %5 = vector.load %arg2[%c0_4, %c0_5, %c0_6] : memref<2x8x32xf32, #tpu.memory_space<vmem>>, vector<2x8x32xf32>
    tpu.vector_store %arg2[%c0_4, %c0_5, %c0_6], %4 {strides = array<i32>} : memref<2x8x32xf32, #tpu.memory_space<vmem>>, vector<2x8x32xf32>,
    return
  }
}

</mosaic_0001>

<bundles_post_ra>
// kernel: tpu_custom_call.1
= control target key start
LH: loop header
LB: loop body
LE: loop exit
PB: predicated region body
PF: predicated region fallthrough
CT: control target
= control target key end

     0   :  { %7 = vsyncpa [#allocation3], 0  ;;  %s170_s0 = inlined_call_operand.hbm [shape: f32[2,8,32], index: 0, kind: input, shape index: {}]   ;;  %s171_s1 = inlined_call_operand.hbm [shape: f32[8,32], index: 1, kind: input, shape index: {}]   ;;  %s172_s2 = inlined_call_operand.hbm [shape: f32[2,8,32], index: 2, kind: output, shape index: {}]  }
   0x1   :  { %8 = vsyncpa [#allocation6], 0 }
   0x2   :  { %9 = vsyncpa [#allocation4], 0  ;;  %s135_s9 = smov [#allocation2]  }
   0x3   :  { %s15_s10 = sshll.u32 %s135_s9, 4  ;;  %s16_s10 = int_to_ptr.vmem [resolvable:$true] %s15_s10 }
   0x4   :  { %s77_s11 = scalar_lea.vmem %s16_s10, 256  ;;  %p82_p1 = scmp.lt.s32.totalorder %s16_s10, %s16_s10 }
   0x5   :  { %p78_p0 = scmp.ne.s32.totalorder %s16_s10, %s77_s11  ;;  %p83_p2 = scmp.lt.s32.totalorder %s77_s11, %s77_s11 }
   0x7   :  { %p84_p3 = por %p83_p2, %p82_p1 }
   0x9   :  { %p85_p4 = pnand %p84_p3, %p78_p0 }
   0xb   :  { %88 = shalt.err (!%p85_p4)
}
   0xc   :  { %s136_s12 = smov 128   ;;  %s137_s13 = smov 8  }
   0xd   :  { %21 = dma.hbm_to_vmem [thread:$0]  %s170_s0, 256, %s16_s10, [#allocation3], %s136_s12, %s136_s12, %s137_s13  }
   0xe   :  { %s138_s16 = smov [#allocation5]  }
   0xf   :  { %s28_s17 = sshll.u32 %s138_s16, 4  ;;  %s29_s17 = int_to_ptr.vmem [resolvable:$true] %s28_s17 }
  0x10   :  { %s97_s18 = scalar_lea.vmem %s29_s17, 128  ;;  %p102_p6 = scmp.lt.s32.totalorder %s29_s17, %s29_s17 }
  0x11   :  { %p98_p5 = scmp.ne.s32.totalorder %s29_s17, %s97_s18  ;;  %p103_p7 = scmp.lt.s32.totalorder %s97_s18, %s97_s18 }
  0x13   :  { %p104_p8 = por %p103_p7, %p102_p6 }
  0x15   :  { %p105_p9 = pnand %p104_p8, %p98_p5 }
  0x17   :  { %108 = shalt.err (!%p105_p9)
}
  0x18   :  { %31 = dma.hbm_to_vmem [thread:$0]  %s171_s1, 128, %s29_s17, [#allocation6]  }
  0x19   :  { %129 = dma.done.wait [#allocation3], 256  }
  0x1a   :  { %130 = vsyncadd [#allocation3], 4294967040 }
  0x1b   :  { %131 = dma.done.wait [#allocation6], 128  }
  0x1c   :  { %132 = vsyncadd [#allocation6], 4294967168  ;;  %s139_s21 = smov [#allocation7]   ;;  %v38_v0 = vld [vmem:[#allocation2] sm:$0xff]  ;;  %v40_v1 = vld [vmem:[#allocation5] sm:$0xff]  ;;  %vm43_vm0 = vcmask 261120  }
  0x1d   :  { %s51_s0 = sshll.u32 %s139_s21, 4  ;;  %v39_v2 = vld [vmem:[#allocation2 + $0x8] sm:$0xff]  ;;  %v41_v3 = vadd.f32 %v40_v1, %v38_v0  ;;  %s52_s0 = int_to_ptr.vmem [resolvable:$true] %s51_s0 }
  0x1e   :  { %v42_v4 = vadd.f32 %v40_v1, %v39_v2  ;;  %s109_s22 = scalar_lea.vmem %s52_s0, 256  ;;  %p114_p11 = scmp.lt.s32.totalorder %s52_s0, %s52_s0 }
  0x1f   :  { %44 = vst.msk [vmem:[#allocation7] sm:$0xff] %vm43_vm0, %v41_v3  ;;  %p110_p10 = scmp.ne.s32.totalorder %s52_s0, %s109_s22  ;;  %p115_p12 = scmp.lt.s32.totalorder %s109_s22, %s109_s22 }
  0x20   :  { %45 = vst.msk [vmem:[#allocation7 + $0x8] sm:$0xff] %vm43_vm0, %v42_v4 }
  0x21   :  { %p116_p13 = por %p115_p12, %p114_p11 }
  0x23   :  { %p117_p0 = pnand %p116_p13, %p110_p10 }
  0x25   :  { %120 = shalt.err (!%p117_p0)
}
  0x26   :  { %57 = dma.vmem_to_hbm [thread:$0]  %s52_s0, 256, %s172_s2, [#allocation4], %s136_s12, %s136_s12, %s137_s13  }
  0x27   :  { %133 = dma.done.wait [#allocation4], 256  }
  0x28   :  { %134 = vsyncadd [#allocation4], 4294967040 }
  0x29   :  { %61 = vsyncpa [#allocation3], 1 }
  0x2a   :  { %62 = vsyncpa [#allocation6], 1 }
  0x2b   :  { %63 = vsyncpa [#allocation4], 1 }

</bundles_post_ra>
